<compile_context>
chip_gen: v5e
topology: v5e:2x2
jax: 0.10.0
libtpu: 0.0.40
codegen_flags: <defaults>
</compile_context>

<pallas_src>
import functools

import jax
import jax.numpy as jnp
from jax import lax
from jax.experimental import pallas as pl
from jax.experimental.pallas import tpu as pltpu

_LANES = 128
_SUBLANES = 8
_DEFAULT_TILE_ROWS = 4096            # 4096 x 128 f32 = 2 MiB per input buffer
_VMEM_LIMIT_BYTES = 32 * 1024 * 1024  # fits v5e/v6e/v7x scoped-VMEM budgets


@functools.lru_cache(maxsize=1)
def _default_num_splits():
    """2 on 2-TensorCore chips (v7x); 1 on single-TC v5e/v6e."""
    try:
        kind = jax.devices()[0].device_kind.lower()
    except Exception:
        return 1
    if "v7" in kind or "tpu7" in kind or "7x" in kind:
        return 2
    return 1


# ---------------------------------------------------------------------------
# Pallas kernel: sum of squared differences (hot path of MSELoss)
# ---------------------------------------------------------------------------
def _sq_diff_sum_kernel(a_ref, b_ref, out_ref, *, tile_rows, valid_rows,
                        inner, mask_threshold, needs_mask):
    c = pl.program_id(0)   # parallel split (one per TensorCore on v7x)
    i = pl.program_id(1)   # sequential reduction axis

    @pl.when(i == 0)
    def _init():
        out_ref[...] = jnp.zeros_like(out_ref)

    # Cast to f32 inside the kernel (inputs stay in native dtype in HBM).
    a = a_ref[...].astype(jnp.float32)
    b = b_ref[...].astype(jnp.float32)
    d = a - b
    d2 = d * d

    groups = tile_rows // _SUBLANES

    def _accumulate(vals):
        # Fold the (tile_rows, 128) tile into one (8, 128) vreg tile with
        # sublane-aligned vector adds (reduce over the major axis only) and
        # accumulate into the resident output block -- no full-tile scratch,
        # no cross-lane/XLU work, no scalar path in the hot loop.
        out_ref[...] += vals.reshape(groups, _SUBLANES, _LANES).sum(axis=0)

    if needs_mask:
        block_idx = c * inner + i
        is_tail = block_idx >= mask_threshold  # partial or clamped block

        @pl.when(jnp.logical_not(is_tail))
        def _full_block():
            _accumulate(d2)

        @pl.when(is_tail)
        def _tail_block():
            # Mask rows past the real array (partial last block and clamped
            # duplicate blocks).  jnp.where so garbage/NaN never leaks.
            row_ids = (block_idx * tile_rows
                       + lax.broadcasted_iota(jnp.int32,
                                              (tile_rows, _LANES), 0))
            _accumulate(jnp.where(row_ids < valid_rows, d2, 0.0))
    else:
        _accumulate(d2)


def pallas_mse(a, b, *, tile_rows=_DEFAULT_TILE_ROWS, num_splits=None):
    """MSE(a, b) with the reduction done inside a Pallas TPU kernel."""
    assert a.shape == b.shape, (a.shape, b.shape)
    n = a.size
    a_flat = a.reshape(-1)
    b_flat = b.reshape(-1)

    rows = n // _LANES
    rem = n - rows * _LANES

    # <128-element tail handled in plain JAX (no jnp.pad copy of both inputs).
    tail_sum = jnp.float32(0.0)
    if rem:
        at = a_flat[rows * _LANES:].astype(jnp.float32)
        bt = b_flat[rows * _LANES:].astype(jnp.float32)
        tail_sum = jnp.sum((at - bt) ** 2)

    if rows == 0:
        return tail_sum / jnp.float32(n)

    # Free reshape when n % 128 == 0; prefix slice only on the ragged path.
    a2 = a_flat[: rows * _LANES].reshape(rows, _LANES)
    b2 = b_flat[: rows * _LANES].reshape(rows, _LANES)

    # Align tile rows to the packed sublane tile (8 rows f32, 16 bf16, 32 i8).
    itemsize = min(a2.dtype.itemsize, b2.dtype.itemsize)
    row_align = _SUBLANES * max(1, 4 // itemsize)
    tile_rows = min(int(tile_rows), -(-rows // row_align) * row_align)
    tile_rows = max(row_align, (tile_rows // row_align) * row_align)

    nblocks = -(-rows // tile_rows)
    req_splits = _default_num_splits() if num_splits is None else int(num_splits)
    n_splits = req_splits if nblocks >= req_splits else 1
    inner = -(-nblocks // n_splits)

    # Static mask decisions: only the partial last block / clamped duplicates
    # ever pay for the iota+where path.
    has_partial = (rows % tile_rows) != 0
    has_clamped = (n_splits * inner) != nblocks
    needs_mask = has_partial or has_clamped
    mask_threshold = (rows // tile_rows) if has_partial else nblocks

    kernel = functools.partial(
        _sq_diff_sum_kernel,
        tile_rows=tile_rows,
        valid_rows=rows,
        inner=inner,
        mask_threshold=mask_threshold,
        needs_mask=needs_mask,
    )

    def in_map(c, i):
        # Clamp so a logically-out-of-range block re-reads the last valid
        # block; its contribution is zeroed by the in-kernel mask.
        return (jnp.minimum(c * inner + i, nblocks - 1), 0)

    main_elems = rows * _LANES
    out_bytes = n_splits * _SUBLANES * _LANES * 4
    cost = pl.CostEstimate(
        flops=3 * main_elems,
        transcendentals=0,
        bytes_accessed=main_elems * (a2.dtype.itemsize + b2.dtype.itemsize)
        + out_bytes,
    )

    partials = pl.pallas_call(
        kernel,
        out_shape=jax.ShapeDtypeStruct((n_splits * _SUBLANES, _LANES),
                                       jnp.float32),
        grid_spec=pltpu.PrefetchScalarGridSpec(
            num_scalar_prefetch=0,
            grid=(n_splits, inner),
            in_specs=[
                pl.BlockSpec((tile_rows, _LANES), in_map),
                pl.BlockSpec((tile_rows, _LANES), in_map),
            ],
            out_specs=pl.BlockSpec((_SUBLANES, _LANES), lambda c, i: (c, 0)),
        ),
        compiler_params=pltpu.CompilerParams(
            dimension_semantics=("parallel", "arbitrary"),
            vmem_limit_bytes=_VMEM_LIMIT_BYTES,
        ),
        cost_estimate=cost,
    )(a2, b2)

    return (jnp.sum(partials) + tail_sum) / jnp.float32(n)


# ---------------------------------------------------------------------------
# Plain-JAX glue reproducing the rest of the module (not part of forward()).
# ---------------------------------------------------------------------------
def _get_rotation_matrix2d(center, angle_deg, scale):
    """OpenCV/kornia-style 2x3 rotation matrices, shape (B, 2, 3)."""
    ang = jnp.deg2rad(angle_deg.astype(jnp.float32))
    alpha = scale * jnp.cos(ang)
    beta = scale * jnp.sin(ang)
    cx, cy = center[:, 0], center[:, 1]
    m00 = alpha
    m01 = beta
    m02 = (1.0 - alpha) * cx - beta * cy
    m10 = -beta
    m11 = alpha
    m12 = beta * cx + (1.0 - alpha) * cy
    row0 = jnp.stack([m00, m01, m02], axis=-1)
    row1 = jnp.stack([m10, m11, m12], axis=-1)
    return jnp.stack([row0, row1], axis=1)


def _warp_affine(x, M, dsize):
    """Bilinear affine warp (zeros padding). x: (B,C,H,W), M: (B,2,3)."""
    B, C, H, W = x.shape
    out_h, out_w = dsize

    ys, xs = jnp.meshgrid(
        jnp.arange(out_h, dtype=jnp.float32),
        jnp.arange(out_w, dtype=jnp.float32),
        indexing="ij",
    )
    dst = jnp.stack([xs, ys], axis=-1)  # (outH, outW, 2) in (x, y)

    A = M[:, :, :2]  # (B,2,2)
    t = M[:, :, 2]   # (B,2)
    det = A[:, 0, 0] * A[:, 1, 1] - A[:, 0, 1] * A[:, 1, 0]
    inv_det = 1.0 / det
    Ainv = jnp.stack(
        [
            jnp.stack([A[:, 1, 1] * inv_det, -A[:, 0, 1] * inv_det], axis=-1),
            jnp.stack([-A[:, 1, 0] * inv_det, A[:, 0, 0] * inv_det], axis=-1),
        ],
        axis=1,
    )  # (B,2,2)

    diff = dst[None, :, :, :] - t[:, None, None, :]          # (B,outH,outW,2)
    src = jnp.einsum("bij,bhwj->bhwi", Ainv, diff)            # (B,outH,outW,2)
    sx, sy = src[..., 0], src[..., 1]

    x0 = jnp.floor(sx)
    y0 = jnp.floor(sy)
    x1 = x0 + 1.0
    y1 = y0 + 1.0
    wx1 = sx - x0
    wx0 = 1.0 - wx1
    wy1 = sy - y0
    wy0 = 1.0 - wy1

    b_idx = jnp.arange(B)[:, None, None]

    def gather(ix, iy):
        valid = (ix >= 0) & (ix < W) & (iy >= 0) & (iy < H)
        ixc = jnp.clip(ix, 0, W - 1).astype(jnp.int32)
        iyc = jnp.clip(iy, 0, H - 1).astype(jnp.int32)
        vals = x[b_idx, :, iyc, ixc]            # (B, outH, outW, C)
        return vals * valid[..., None].astype(x.dtype)

    out = (
        gather(x0, y0) * (wx0 * wy0)[..., None]
        + gather(x1, y0) * (wx1 * wy0)[..., None]
        + gather(x0, y1) * (wx0 * wy1)[..., None]
        + gather(x1, y1) * (wx1 * wy1)[..., None]
    )
    return jnp.transpose(out, (0, 3, 1, 2))  # back to NCHW


class TfEquivarianceLoss:
    """JAX/Pallas port of the PyTorch TfEquivarianceLoss module."""

    def __init__(self, transform_type="rotation", consistency_type="mse",
                 batch_size=32, max_angle=90, input_hw=(256, 128)):
        if consistency_type != "mse":
            raise ValueError(
                "Incorrect consistency_type {}".format(consistency_type)
            )
        self.transform_type = transform_type
        self.batch_size = batch_size
        self.max_angle = max_angle
        self.input_hw = input_hw
        self.tf_matrices = None

    def set_tf_matrices(self, key):
        if self.transform_type == "rotation":
            self.tf_matrices = self._get_rotation(key)

    def _get_rotation(self, key):
        center = jnp.ones((self.batch_size, 2), jnp.float32)
        center = center.at[:, 0].set(self.input_hw[1] / 2.0)
        center = center.at[:, 1].set(self.input_hw[0] / 2.0)
        angle = jax.random.randint(
            key, (self.batch_size,), -self.max_angle, self.max_angle + 1
        )
        scale = jnp.ones((self.batch_size,), jnp.float32)
        return _get_rotation_matrix2d(center, angle, scale)

    def transform(self, x):
        # TODO(synk): input resizing (torchvision Resize) when x.shape[2:]
        # != input_hw is not implemented; demo always uses matching sizes.
        return _warp_affine(x.astype(jnp.float32), self.tf_matrices,
                            self.input_hw)

    def __call__(self, tfx, ftx):
        return pallas_mse(tfx, ftx)


def conv1x1_no_bias(x, w):
    """nn.Conv2d(Cin, Cout, 1, bias=False) on NCHW input."""
    return jnp.einsum("oc,bchw->bohw", w[:, :, 0, 0], x)


if __name__ == "__main__":
    key = jax.random.PRNGKey(0)
    k_x, k_w, k_ang = jax.random.split(key, 3)

    B, C, H, W = 2, 4, 16, 16
    x = jax.random.uniform(k_x, (B, C, H, W), jnp.float32)
    # deterministic conv weights (1x1, no bias), shape (out_ch, in_ch, 1, 1)
    w = 0.1 * jax.random.normal(k_w, (1, C, 1, 1), jnp.float32)

    tf_equiv_loss = TfEquivarianceLoss(
        transform_type="rotation",
        consistency_type="mse",
        batch_size=B,
        max_angle=90,
        input_hw=(H, W),
    )
    tf_equiv_loss.set_tf_matrices(k_ang)

    fx = conv1x1_no_bias(x, w)            # model(x)
    tfx = tf_equiv_loss.transform(fx)     # T(model(x))
    tx = tf_equiv_loss.transform(x)       # T(x)
    ftx = conv1x1_no_bias(tx, w)          # model(T(x))

    loss = tf_equiv_loss(tfx, ftx)        # Pallas MSE kernel
    loss = jax.block_until_ready(loss)
    # 1x1 conv commutes with the spatial warp -> equivariance loss ~ 0
    assert float(loss) < 1e-5, float(loss)

    # Sanity checks of the kernel against the jnp reference, covering the
    # single-block, multi-block, forced-split, ragged/tail, bf16 and tiny
    # (<128 element, pure-JAX) paths.
    def ref_mse(u, v):
        return jnp.mean((u.astype(jnp.float32) - v.astype(jnp.float32)) ** 2)

    tests = [
        ((2, 4, 16, 16), jnp.float32, {}),                       # single block
        ((2, 4, 16, 16), jnp.float32, dict(tile_rows=8,
                                           num_splits=2)),       # clean split
        ((3, 5, 7, 11), jnp.float32, {}),                         # ragged tail
        ((1, 1, 10, 128), jnp.float32, dict(tile_rows=8,
                                            num_splits=2)),      # split + mask
        ((2, 8, 64, 128), jnp.bfloat16, dict(tile_rows=256)),     # bf16, inner>1
        ((3, 5, 7), jnp.float32, {}),                             # n < 128
    ]
    for idx, (shape, dtype, kwargs) in enumerate(tests):
        ka, kb = jax.random.split(jax.random.fold_in(key, idx))
        u = jax.random.normal(ka, shape, jnp.float32).astype(dtype)
        v = jax.random.normal(kb, shape, jnp.float32).astype(dtype)
        got = jax.block_until_ready(pallas_mse(u, v, **kwargs))
        want = ref_mse(u, v)
        assert jnp.allclose(got, want, rtol=1e-5, atol=1e-6), (shape, got, want)

    print("KERNEL_OK")
</pallas_src>

<mosaic_0001>
module attributes {stable_mosaic.version = 11 : i64} {
  func.func @_sq_diff_sum_kernel(%arg0: i32, %arg1: i32, %arg2: memref<8x128xf32, #tpu.memory_space<vmem>>, %arg3: memref<8x128xf32, #tpu.memory_space<vmem>>, %arg4: memref<8x128xf32, #tpu.memory_space<vmem>>) attributes {dimension_semantics = [#tpu.dimension_semantics<parallel>, #tpu.dimension_semantics<arbitrary>], iteration_bounds = array<i64: 1, 1>, scalar_prefetch = 0 : i64, scratch_operands = 0 : i64, tpu.core_type = #tpu.core_type<tc>, window_params = [{transform_indices = @transform_0, window_bounds = array<i64: 8, 128>}, {transform_indices = @transform_1, window_bounds = array<i64: 8, 128>}, {transform_indices = @transform_2, window_bounds = array<i64: 8, 128>}]} {
    %c0_i32 = arith.constant 0 : i32
    %0 = arith.cmpi eq, %arg1, %c0_i32 : i32
    %1 = arith.extui %0 : i1 to i32
    %c0_i32_0 = arith.constant 0 : i32
    %2 = arith.cmpi ne, %1, %c0_i32_0 : i32
    scf.if %2 {
      %cst = arith.constant 0.000000e+00 : f32
      %15 = vector.broadcast %cst : f32 to vector<8x128xf32>
      %c0_7 = arith.constant 0 : index
      %c0_8 = arith.constant 0 : index
      %16 = vector.load %arg4[%c0_7, %c0_8] : memref<8x128xf32, #tpu.memory_space<vmem>>, vector<8x128xf32>
      tpu.vector_store %arg4[%c0_7, %c0_8], %15 {strides = array<i32>} : memref<8x128xf32, #tpu.memory_space<vmem>>, vector<8x128xf32>,
    } else {
    }
    %c0 = arith.constant 0 : index
    %c0_1 = arith.constant 0 : index
    %3 = vector.load %arg2[%c0, %c0_1] : memref<8x128xf32, #tpu.memory_space<vmem>>, vector<8x128xf32>
    %c0_2 = arith.constant 0 : index
    %c0_3 = arith.constant 0 : index
    %4 = vector.load %arg3[%c0_2, %c0_3] : memref<8x128xf32, #tpu.memory_space<vmem>>, vector<8x128xf32>
    %5 = arith.subf %3, %4 : vector<8x128xf32>
    %6 = arith.mulf %5, %5 : vector<8x128xf32>
    %c1_i32 = arith.constant 1 : i32
    %7 = arith.muli %arg0, %c1_i32 : i32
    %8 = arith.addi %7, %arg1 : i32
    %c0_i32_4 = arith.constant 0 : i32
    %9 = arith.cmpi sge, %8, %c0_i32_4 : i32
    %true = arith.constant true
    %10 = arith.xori %9, %true : i1
    %11 = arith.extui %10 : i1 to i32
    %c0_i32_5 = arith.constant 0 : i32
    %12 = arith.cmpi ne, %11, %c0_i32_5 : i32
    scf.if %12 {
      %c0_7 = arith.constant 0 : index
      %c0_8 = arith.constant 0 : index
      %15 = vector.load %arg4[%c0_7, %c0_8] : memref<8x128xf32, #tpu.memory_space<vmem>>, vector<8x128xf32>
      %16 = vector.shape_cast %6 : vector<8x128xf32> to vector<1x8x128xf32>
      %cst = arith.constant dense<0.000000e+00> : vector<8x128xf32>
      %17 = vector.multi_reduction <add>, %16, %cst [0] : vector<1x8x128xf32> to vector<8x128xf32>
      %18 = arith.addf %15, %17 : vector<8x128xf32>
      %c0_9 = arith.constant 0 : index
      %c0_10 = arith.constant 0 : index
      %19 = vector.load %arg4[%c0_9, %c0_10] : memref<8x128xf32, #tpu.memory_space<vmem>>, vector<8x128xf32>
      tpu.vector_store %arg4[%c0_9, %c0_10], %18 {strides = array<i32>} : memref<8x128xf32, #tpu.memory_space<vmem>>, vector<8x128xf32>,
    } else {
    }
    %13 = arith.extui %9 : i1 to i32
    %c0_i32_6 = arith.constant 0 : i32
    %14 = arith.cmpi ne, %13, %c0_i32_6 : i32
    scf.if %14 {
      %c8_i32 = arith.constant 8 : i32
      %15 = arith.muli %8, %c8_i32 : i32
      %16 = tpu.iota {dimensions = array<i32: 0>} : vector<8x128xi32>
      %17 = vector.broadcast %15 : i32 to vector<8x128xi32>
      %18 = arith.addi %17, %16 : vector<8x128xi32>
      %c4_i32 = arith.constant 4 : i32
      %19 = vector.broadcast %c4_i32 : i32 to vector<8x128xi32>
      %20 = arith.cmpi slt, %18, %19 : vector<8x128xi32>
      %cst = arith.constant 0.000000e+00 : f32
      %21 = vector.broadcast %cst : f32 to vector<8x128xf32>
      %22 = arith.select %20, %6, %21 : vector<8x128xi1>, vector<8x128xf32>
      %c0_7 = arith.constant 0 : index
      %c0_8 = arith.constant 0 : index
      %23 = vector.load %arg4[%c0_7, %c0_8] : memref<8x128xf32, #tpu.memory_space<vmem>>, vector<8x128xf32>
      %24 = vector.shape_cast %22 : vector<8x128xf32> to vector<1x8x128xf32>
      %cst_9 = arith.constant dense<0.000000e+00> : vector<8x128xf32>
      %25 = vector.multi_reduction <add>, %24, %cst_9 [0] : vector<1x8x128xf32> to vector<8x128xf32>
      %26 = arith.addf %23, %25 : vector<8x128xf32>
      %c0_10 = arith.constant 0 : index
      %c0_11 = arith.constant 0 : index
      %27 = vector.load %arg4[%c0_10, %c0_11] : memref<8x128xf32, #tpu.memory_space<vmem>>, vector<8x128xf32>
      tpu.vector_store %arg4[%c0_10, %c0_11], %26 {strides = array<i32>} : memref<8x128xf32, #tpu.memory_space<vmem>>, vector<8x128xf32>,
    } else {
    }
    return
  }
  func.func @transform_0(%arg0: i32, %arg1: i32) -> (i32, i32) {
    %c1_i32 = arith.constant 1 : i32
    %0 = arith.muli %arg0, %c1_i32 : i32
    %1 = arith.addi %0, %arg1 : i32
    %c0_i32 = arith.constant 0 : i32
    %2 = arith.minsi %1, %c0_i32 : i32
    %c0_i32_0 = arith.constant 0 : i32
    %c0_i32_1 = arith.constant 0 : i32
    return %2, %c0_i32_0 : i32, i32
  }
  func.func @transform_1(%arg0: i32, %arg1: i32) -> (i32, i32) {
    %c1_i32 = arith.constant 1 : i32
    %0 = arith.muli %arg0, %c1_i32 : i32
    %1 = arith.addi %0, %arg1 : i32
    %c0_i32 = arith.constant 0 : i32
    %2 = arith.minsi %1, %c0_i32 : i32
    %c0_i32_0 = arith.constant 0 : i32
    %c0_i32_1 = arith.constant 0 : i32
    return %2, %c0_i32_0 : i32, i32
  }
  func.func @transform_2(%arg0: i32, %arg1: i32) -> (i32, i32) {
    %c0_i32 = arith.constant 0 : i32
    %c0_i32_0 = arith.constant 0 : i32
    return %arg0, %c0_i32 : i32, i32
  }
}

</mosaic_0001>

<bundles_post_ra>
// kernel: tpu_custom_call.1
= control target key start
LH: loop header
LB: loop body
LE: loop exit
PB: predicated region body
PF: predicated region fallthrough
CT: control target
= control target key end

     0   :  { %7 = vsyncpa [#allocation3], 0  ;;  %s246_s0 = inlined_call_operand.hbm [shape: f32[4,128], index: 0, kind: input, shape index: {}]   ;;  %s247_s1 = inlined_call_operand.hbm [shape: f32[4,128], index: 1, kind: input, shape index: {}]   ;;  %s248_s2 = inlined_call_operand.hbm [shape: f32[8,128], index: 2, kind: output, shape index: {}]  }
   0x1   :  { %8 = vsyncpa [#allocation6], 0 }
   0x2   :  { %9 = vsyncpa [#allocation4], 0 }
   0x3   :  { %20 = vsyncadd [#allocation3], 64  ;;  %s25_s11 = sshll.u32 %s246_s0, 4  ;;  %s217_s12 = smov [#allocation2]   ;;  %s26_s11 = int_to_ptr.hbm [resolvable:$true] %s25_s11 }
   0x4   :  { %s27_s13 = sshll.u32 %s217_s12, 4  ;;  %s218_s14 = smov 64   ;;  %s28_s13 = int_to_ptr.vmem [resolvable:$true] %s27_s13 }
   0x5   :  { %s219_s15 = smov 4  }
   0x6   :  { %33 = dma.hbm_to_vmem [thread:$0]  %s26_s11, 64, %s28_s13, [#allocation3], %s218_s14, %s218_s14, %s219_s15  }
   0x7   :  { %44 = vsyncadd [#allocation6], 64  ;;  %s49_s18 = sshll.u32 %s247_s1, 4  ;;  %s220_s19 = smov [#allocation5]   ;;  %s50_s18 = int_to_ptr.hbm [resolvable:$true] %s49_s18 }
   0x8   :  { %s51_s20 = sshll.u32 %s220_s19, 4  ;;  %s52_s20 = int_to_ptr.vmem [resolvable:$true] %s51_s20 }
   0x9   :  { %57 = dma.hbm_to_vmem [thread:$0]  %s50_s18, 64, %s52_s20, [#allocation6], %s218_s14, %s218_s14, %s219_s15  }
   0xa   :  { %211 = dma.done.wait [#allocation3], 128  }
   0xb   :  { %212 = vsyncadd [#allocation3], 4294967168 }
   0xc   :  { %213 = dma.done.wait [#allocation6], 128  }
   0xd   :  { %214 = vsyncadd [#allocation6], 4294967168  ;;  %v101_v0 = vlaneseq  ;;  %v83_v2 = vld [vmem:[#allocation2] sm:$0xff]  ;;  %v84_v3 = vld [vmem:[#allocation5] sm:$0xff]  ;;  %s221_s0 = smov [#allocation7]   ;;  %s118_s23 = sshll.u32 %s248_s2, 4  ;;  %s119_s23 = int_to_ptr.hbm [resolvable:$true] %s118_s23 }
   0xe   :  { %v85_v4 = vsub.f32 %v83_v2, %v84_v3  ;;  %s116_s21 = sshll.u32 %s221_s0, 4  ;;  %s117_s21 = int_to_ptr.vmem [resolvable:$true] %s116_s21 }
   0xf   :  { %v102_v1 = vshrl.u32 %v101_v0, 7 }
  0x10   :  { %v86_v5 = vmul.f32 %v85_v4, %v85_v4 }
  0x11   :  { %vm105_vm0 = vcmp.lt.s32.totalorder %v102_v1, 4 }
  0x12   :  { %v106_v6 = vsel %vm105_vm0, %v86_v5, 0.0 }
  0x13   :  { %110 = vst [vmem:[#allocation7] sm:$0xff] %v106_v6 }
  0x14   :  { %121 = dma.vmem_to_hbm [thread:$0]  %s117_s21, 128, %s119_s23, [#allocation4]  }
  0x15   :  { %215 = dma.done.wait [#allocation4], 128  }
  0x16   :  { %216 = vsyncadd [#allocation4], 4294967168 }
  0x17   :  { %126 = vsyncpa [#allocation3], 1 }
  0x18   :  { %127 = vsyncpa [#allocation6], 1 }
  0x19   :  { %128 = vsyncpa [#allocation4], 1 }

</bundles_post_ra>
